<compile_context>
chip_gen: v6e
topology: v6e:2x2x1
jax: 0.10.0
libtpu: 0.0.40
codegen_flags: <defaults>
</compile_context>

<pallas_src>
import functools
import numpy as np
import jax
import jax.numpy as jnp
from jax import lax
from jax.experimental import pallas as pl
from jax.experimental.pallas import tpu as pltpu

DECAY = 0.3
THRESH = 0.5


# ---------------------------------------------------------------------------
# Pallas kernel: one grid step per batch element, all slabs are (rows, H*W).
# ---------------------------------------------------------------------------
def _hybrid_kernel(cpatch_ref, mem_ref, spike_ref, w_ref, b_ref, poolT_ref,
                   mem_out_ref, spike_out_ref, y_out_ref,
                   pspike_out_ref, py_out_ref, *, cs, cr):
    # One fused conv matmul producing [conv_s ; conv_r1 ; conv_r2] stacked on sublanes.
    conv = jnp.dot(w_ref[...], cpatch_ref[...],
                   preferred_element_type=jnp.float32) + b_ref[...]
    conv_s = conv[:cs, :]             # scnn_fc(inputs)
    conv_r1 = conv[cs:cs + cr, :]     # rcnn_fc(inputs)
    conv_r2 = conv[cs + cr:, :]       # rcnn_fv(rcnn_y)

    # SCNN LIF membrane update + Heaviside spike (uses the OLD spike, strict >).
    mem = mem_ref[...]
    spike = spike_ref[...]
    mem_new = mem * DECAY * (1.0 - spike) + conv_s
    spike_new = ((mem_new - THRESH) > 0.0).astype(jnp.float32)

    # RCNN update: tanh(conv1(x) + relu(conv2(y))).
    y_new = jnp.tanh(conv_r1 + jnp.maximum(conv_r2, 0.0))

    mem_out_ref[...] = mem_new
    spike_out_ref[...] = spike_new
    y_out_ref[...] = y_new

    # Fused average pooling: one matmul for both [spike ; y] against the shared P^T.
    sy = jnp.concatenate([spike_new, y_new], axis=0)           # (cs+cr, HW)
    pooled = jnp.dot(sy, poolT_ref[...], preferred_element_type=jnp.float32)
    pspike_out_ref[...] = pooled[:cs, :]
    py_out_ref[...] = pooled[cs:, :]


# ---------------------------------------------------------------------------
# Glue: im2col (NCHW, spatial-on-lanes), pooling matrix, weight flattening.
# ---------------------------------------------------------------------------
def _im2col_T(x_nchw, K, stride, pad):
    """NCHW -> (B, K*K*C, Ho*Wo) patches; row order (kh, kw, c), spatial flattened on lanes."""
    xp = jnp.pad(x_nchw, ((0, 0), (0, 0), (pad, pad), (pad, pad)))
    B, C, Hp, Wp = xp.shape
    Ho = (Hp - K) // stride + 1
    Wo = (Wp - K) // stride + 1
    cols = []
    for kh in range(K):
        for kw in range(K):
            cols.append(xp[:, :, kh:kh + Ho * stride:stride,
                           kw:kw + Wo * stride:stride])        # (B, C, Ho, Wo)
    pat = jnp.stack(cols, axis=1)                              # (B, K*K, C, Ho, Wo)
    return pat.reshape(B, K * K * C, Ho * Wo), Ho, Wo


def _flatten_conv_weight_T(W):
    # torch (Cout, Cin, K, K) -> (Cout, K*K*Cin), column order (kh, kw, cin) to match im2col.
    cout, cin, k, _ = W.shape
    return jnp.transpose(W, (0, 2, 3, 1)).reshape(cout, k * k * cin)


def _make_pool_matrix_T(H, W, k, s):
    # P^T : (H*W, Ho*Wo), so pooled = data(C, H*W) @ P^T with a dense K=H*W contraction.
    Ho = (H - k) // s + 1
    Wo = (W - k) // s + 1
    PT = np.zeros((H * W, Ho * Wo), np.float32)
    inv = 1.0 / float(k * k)
    for i in range(Ho):
        for j in range(Wo):
            for di in range(k):
                for dj in range(k):
                    PT[(i * s + di) * W + (j * s + dj), i * Wo + j] = inv
    return jnp.asarray(PT), Ho, Wo


def hybrid_layer_forward(inputs, scnn_mem, scnn_spike, rcnn_y, params, *,
                         conv_k=3, conv_stride=1, fc_pad=1, fv_pad=1,
                         pool_k=2, pool_stride=2, matmul_dtype=jnp.float32):
    """Matches HybridLayer.forward (avr_pool=True, rcnn_channels>0, scnn_channels>0)."""
    w_sfc, b_sfc, w_rfc, b_rfc, w_rfv, b_rfv = params
    B, Cin, H, W = inputs.shape
    Cs = w_sfc.shape[0]
    Cr = w_rfc.shape[0]

    x_patch, Ho, Wo = _im2col_T(inputs, conv_k, conv_stride, fc_pad)
    y_patch, Ho2, Wo2 = _im2col_T(rcnn_y, conv_k, conv_stride, fv_pad)
    assert (Ho, Wo) == (Ho2, Wo2), "rcnn_fv output must match rcnn_fc output"
    HW = Ho * Wo
    Dfc = conv_k * conv_k * Cin
    Dfv = conv_k * conv_k * Cr
    Dtot = Dfc + Dfv
    Ctot = Cs + 2 * Cr

    # Single fused patch slab per batch: [x_patches ; y_patches] -> (B, Dtot, HW).
    cpatch = jnp.concatenate([x_patch, y_patch], axis=1)

    # NCHW state -> (B, C, H*W): already lane-dense, no transposes.
    mem_flat = scnn_mem.reshape(B, Cs, HW)
    spike_flat = scnn_spike.reshape(B, Cs, HW)

    # Block weight for the single fused conv matmul:
    #   [ w_sfc   0     ]   rows      0 .. Cs
    #   [ w_rfc   0     ]   rows     Cs .. Cs+Cr
    #   [ 0       w_rfv ]   rows  Cs+Cr .. Cs+2Cr
    wf_sfc = _flatten_conv_weight_T(w_sfc)          # (Cs, Dfc)
    wf_rfc = _flatten_conv_weight_T(w_rfc)          # (Cr, Dfc)
    wf_rfv = _flatten_conv_weight_T(w_rfv)          # (Cr, Dfv)
    w_top = jnp.concatenate(
        [jnp.concatenate([wf_sfc, wf_rfc], axis=0),
         jnp.zeros((Cs + Cr, Dfv), jnp.float32)], axis=1)
    w_bot = jnp.concatenate(
        [jnp.zeros((Cr, Dfc), jnp.float32), wf_rfv], axis=1)
    w_blk = jnp.concatenate([w_top, w_bot], axis=0)              # (Ctot, Dtot)
    b_blk = jnp.concatenate([b_sfc, b_rfc, b_rfv]).reshape(Ctot, 1)

    # Optional low-precision MXU inputs (bandwidth win on v6e/v7x); state math stays f32.
    cpatch = cpatch.astype(matmul_dtype)
    w_blk = w_blk.astype(matmul_dtype)

    PT, Hp_o, Wp_o = _make_pool_matrix_T(Ho, Wo, pool_k, pool_stride)
    HWp = Hp_o * Wp_o

    def batched(rows, cols):
        return pl.BlockSpec((None, rows, cols), lambda b: (b, 0, 0))

    def full2d(rows, cols):
        return pl.BlockSpec((rows, cols), lambda b: (0, 0))

    out_shapes = (
        jax.ShapeDtypeStruct((B, Cs, HW), jnp.float32),    # scnn_mem
        jax.ShapeDtypeStruct((B, Cs, HW), jnp.float32),    # scnn_spike
        jax.ShapeDtypeStruct((B, Cr, HW), jnp.float32),    # rcnn_y
        jax.ShapeDtypeStruct((B, Cs, HWp), jnp.float32),   # pooled scnn_spike
        jax.ShapeDtypeStruct((B, Cr, HWp), jnp.float32),   # pooled rcnn_y
    )
    out_specs = (batched(Cs, HW), batched(Cs, HW), batched(Cr, HW),
                 batched(Cs, HWp), batched(Cr, HWp))

    itemsize = jnp.dtype(matmul_dtype).itemsize
    flops = B * (2 * Ctot * Dtot * HW            # fused conv matmul
                 + 2 * (Cs + Cr) * HW * HWp      # fused pool matmul
                 + 8 * Cs * HW + 4 * Cr * HW)    # LIF + relu/add elementwise
    bytes_accessed = (B * Dtot * HW * itemsize                  # patches
                      + 2 * B * Cs * HW * 4                     # mem, spike in
                      + Ctot * Dtot * itemsize + Ctot * 4       # weights, bias
                      + HW * HWp * 4                            # pool matrix
                      + B * (2 * Cs + Cr) * HW * 4              # mem/spike/y out
                      + B * (Cs + Cr) * HWp * 4)                # pooled out
    cost = pl.CostEstimate(flops=flops, transcendentals=B * Cr * HW,
                           bytes_accessed=bytes_accessed)

    kernel = functools.partial(_hybrid_kernel, cs=Cs, cr=Cr)

    outs = pl.pallas_call(
        kernel,
        out_shape=out_shapes,
        grid=(B,),
        in_specs=[batched(Dtot, HW),
                  batched(Cs, HW), batched(Cs, HW),
                  full2d(Ctot, Dtot), full2d(Ctot, 1),
                  full2d(HW, HWp)],
        out_specs=out_specs,
        compiler_params=pltpu.CompilerParams(
            dimension_semantics=("parallel",)),
        cost_estimate=cost,
    )(cpatch, mem_flat, spike_flat, w_blk, b_blk, PT)

    mem_o, spike_o, y_o, pspike_o, py_o = outs
    return (mem_o.reshape(B, Cs, Ho, Wo),
            spike_o.reshape(B, Cs, Ho, Wo),
            y_o.reshape(B, Cr, Ho, Wo),
            pspike_o.reshape(B, Cs, Hp_o, Wp_o),
            py_o.reshape(B, Cr, Hp_o, Wp_o))


# ---------------------------------------------------------------------------
# Pure-JAX reference (mirrors the PyTorch forward) for a correctness check.
# ---------------------------------------------------------------------------
def reference_forward(inputs, scnn_mem, scnn_spike, rcnn_y, params, *,
                      conv_stride=1, fc_pad=1, fv_pad=1, pool_k=2, pool_stride=2):
    w_sfc, b_sfc, w_rfc, b_rfc, w_rfv, b_rfv = params

    def conv(x, w, b, pad):
        out = lax.conv_general_dilated(
            x, w, (conv_stride, conv_stride), [(pad, pad), (pad, pad)],
            dimension_numbers=('NCHW', 'OIHW', 'NCHW'))
        return out + b[None, :, None, None]

    conv_s = conv(inputs, w_sfc, b_sfc, fc_pad)
    mem = scnn_mem * DECAY * (1.0 - scnn_spike) + conv_s
    spike = ((mem - THRESH) > 0.0).astype(jnp.float32)

    y = jnp.tanh(conv(inputs, w_rfc, b_rfc, fc_pad) +
                 jax.nn.relu(conv(rcnn_y, w_rfv, b_rfv, fv_pad)))

    def avgpool(x):
        s = lax.reduce_window(x, 0.0, lax.add, (1, 1, pool_k, pool_k),
                              (1, 1, pool_stride, pool_stride), 'VALID')
        return s / float(pool_k * pool_k)

    return mem, spike, y, avgpool(spike), avgpool(y)


# ---------------------------------------------------------------------------
if __name__ == "__main__":
    # Small synthetic config: input_channels=2, rcnn_channels=4, scnn_channels=4,
    # conv_kernel_size=3, conv_stride=1, fc_padding=1, fv_padding=1,
    # pool_kernel_size=2, pool_stride=2, avr_pool=True.
    B, Cin, H, W = 2, 2, 16, 16
    Cs, Cr, K = 4, 4, 3

    key = jax.random.PRNGKey(0)

    def conv_params(key, cout, cin, k):
        kw, kb = jax.random.split(key)
        bound = 1.0 / np.sqrt(cin * k * k)
        Wt = jax.random.uniform(kw, (cout, cin, k, k), jnp.float32, -bound, bound)
        b = jax.random.uniform(kb, (cout,), jnp.float32, -bound, bound)
        return Wt, b

    k1, k2, k3, k4, k5, k6, k7 = jax.random.split(key, 7)
    w_sfc, b_sfc = conv_params(k1, Cs, Cin, K)     # scnn_fc
    w_rfc, b_rfc = conv_params(k2, Cr, Cin, K)     # rcnn_fc
    w_rfv, b_rfv = conv_params(k3, Cr, Cr, K)      # rcnn_fv
    params = (w_sfc, b_sfc, w_rfc, b_rfc, w_rfv, b_rfv)

    inputs = jax.random.normal(k4, (B, Cin, H, W), jnp.float32)
    scnn_mem = 0.3 * jax.random.normal(k5, (B, Cs, H, W), jnp.float32)
    scnn_spike = (jax.random.uniform(k6, (B, Cs, H, W)) > 0.5).astype(jnp.float32)
    rcnn_y = jnp.tanh(jax.random.normal(k7, (B, Cr, H, W), jnp.float32))

    outs = hybrid_layer_forward(inputs, scnn_mem, scnn_spike, rcnn_y, params)
    outs = jax.block_until_ready(outs)

    refs = reference_forward(inputs, scnn_mem, scnn_spike, rcnn_y, params)
    names = ["scnn_mem", "scnn_spike", "rcnn_y", "pooled_scnn_spike", "pooled_rcnn_y"]
    for name, o, r in zip(names, outs, refs):
        assert o.shape == r.shape, (name, o.shape, r.shape)
        np.testing.assert_allclose(np.asarray(o), np.asarray(r),
                                   atol=1e-4, rtol=1e-4, err_msg=name)

    print("KERNEL_OK")
</pallas_src>

<mosaic_0001>
module attributes {stable_mosaic.version = 11 : i64} {
  func.func @_hybrid_kernel(%arg0: i32, %arg1: memref<1x54x256xf32, #tpu.memory_space<vmem>>, %arg2: memref<1x4x256xf32, #tpu.memory_space<vmem>>, %arg3: memref<1x4x256xf32, #tpu.memory_space<vmem>>, %arg4: memref<12x54xf32, #tpu.memory_space<vmem>>, %arg5: memref<12x1xf32, #tpu.memory_space<vmem>>, %arg6: memref<256x64xf32, #tpu.memory_space<vmem>>, %arg7: memref<1x4x256xf32, #tpu.memory_space<vmem>>, %arg8: memref<1x4x256xf32, #tpu.memory_space<vmem>>, %arg9: memref<1x4x256xf32, #tpu.memory_space<vmem>>, %arg10: memref<1x4x64xf32, #tpu.memory_space<vmem>>, %arg11: memref<1x4x64xf32, #tpu.memory_space<vmem>>) attributes {dimension_semantics = [#tpu.dimension_semantics<parallel>], iteration_bounds = array<i64: 2>, scalar_prefetch = 0 : i64, scratch_operands = 0 : i64, tpu.core_type = #tpu.core_type<tc>, window_params = [{transform_indices = @transform_0, window_bounds = array<i64: 1, 54, 256>}, {transform_indices = @transform_1, window_bounds = array<i64: 1, 4, 256>}, {transform_indices = @transform_2, window_bounds = array<i64: 1, 4, 256>}, {pipeline_mode = #tpu.pipeline_mode<synchronous>, transform_indices = @transform_3, window_bounds = array<i64: 12, 54>}, {pipeline_mode = #tpu.pipeline_mode<synchronous>, transform_indices = @transform_4, window_bounds = array<i64: 12, 1>}, {pipeline_mode = #tpu.pipeline_mode<synchronous>, transform_indices = @transform_5, window_bounds = array<i64: 256, 64>}, {transform_indices = @transform_6, window_bounds = array<i64: 1, 4, 256>}, {transform_indices = @transform_7, window_bounds = array<i64: 1, 4, 256>}, {transform_indices = @transform_8, window_bounds = array<i64: 1, 4, 256>}, {transform_indices = @transform_9, window_bounds = array<i64: 1, 4, 64>}, {transform_indices = @transform_10, window_bounds = array<i64: 1, 4, 64>}]} {
    %c0 = arith.constant 0 : index
    %c0_0 = arith.constant 0 : index
    %0 = vector.load %arg4[%c0, %c0_0] : memref<12x54xf32, #tpu.memory_space<vmem>>, vector<12x54xf32>
    %c0_1 = arith.constant 0 : index
    %c0_2 = arith.constant 0 : index
    %c0_3 = arith.constant 0 : index
    %1 = vector.load %arg1[%c0_1, %c0_2, %c0_3] : memref<1x54x256xf32, #tpu.memory_space<vmem>>, vector<1x54x256xf32>
    %2 = vector.shape_cast %1 : vector<1x54x256xf32> to vector<54x256xf32>
    %cst = arith.constant dense<0.000000e+00> : vector<12x256xf32>
    %3 = tpu.matmul %0, %2, %cst {dimension_numbers = #tpu.dot_dimension_numbers<[1], [0], [0], [1], [0, 0, 1, 1], [], []>} : vector<12x54xf32>, vector<54x256xf32>, vector<12x256xf32> -> vector<12x256xf32>
    %c0_4 = arith.constant 0 : index
    %c0_5 = arith.constant 0 : index
    %4 = vector.load %arg5[%c0_4, %c0_5] : memref<12x1xf32, #tpu.memory_space<vmem>>, vector<12x1xf32>
    %5 = vector.broadcast %4 : vector<12x1xf32> to vector<12x256xf32>
    %6 = arith.addf %3, %5 : vector<12x256xf32>
    %7 = vector.extract_strided_slice %6 {offsets = [0, 0], sizes = [4, 256], strides = [1, 1]} : vector<12x256xf32> to vector<4x256xf32>
    %8 = vector.extract_strided_slice %6 {offsets = [4, 0], sizes = [4, 256], strides = [1, 1]} : vector<12x256xf32> to vector<4x256xf32>
    %9 = vector.extract_strided_slice %6 {offsets = [8, 0], sizes = [4, 256], strides = [1, 1]} : vector<12x256xf32> to vector<4x256xf32>
    %c0_6 = arith.constant 0 : index
    %c0_7 = arith.constant 0 : index
    %c0_8 = arith.constant 0 : index
    %10 = vector.load %arg2[%c0_6, %c0_7, %c0_8] : memref<1x4x256xf32, #tpu.memory_space<vmem>>, vector<1x4x256xf32>
    %11 = vector.shape_cast %10 : vector<1x4x256xf32> to vector<4x256xf32>
    %c0_9 = arith.constant 0 : index
    %c0_10 = arith.constant 0 : index
    %c0_11 = arith.constant 0 : index
    %12 = vector.load %arg3[%c0_9, %c0_10, %c0_11] : memref<1x4x256xf32, #tpu.memory_space<vmem>>, vector<1x4x256xf32>
    %13 = vector.shape_cast %12 : vector<1x4x256xf32> to vector<4x256xf32>
    %cst_12 = arith.constant 3.000000e-01 : f32
    %14 = vector.broadcast %cst_12 : f32 to vector<4x256xf32>
    %15 = arith.mulf %11, %14 : vector<4x256xf32>
    %cst_13 = arith.constant 1.000000e+00 : f32
    %16 = vector.broadcast %cst_13 : f32 to vector<4x256xf32>
    %17 = arith.subf %16, %13 : vector<4x256xf32>
    %18 = arith.mulf %15, %17 : vector<4x256xf32>
    %19 = arith.addf %18, %7 : vector<4x256xf32>
    %cst_14 = arith.constant 5.000000e-01 : f32
    %20 = vector.broadcast %cst_14 : f32 to vector<4x256xf32>
    %21 = arith.subf %19, %20 : vector<4x256xf32>
    %cst_15 = arith.constant 0.000000e+00 : f32
    %22 = vector.broadcast %cst_15 : f32 to vector<4x256xf32>
    %23 = arith.cmpf ogt, %21, %22 : vector<4x256xf32>
    %24 = arith.extui %23 : vector<4x256xi1> to vector<4x256xi32>
    %25 = arith.sitofp %24 : vector<4x256xi32> to vector<4x256xf32>
    %cst_16 = arith.constant 0.000000e+00 : f32
    %26 = vector.broadcast %cst_16 : f32 to vector<4x256xf32>
    %27 = arith.maximumf %9, %26 : vector<4x256xf32>
    %28 = arith.addf %8, %27 : vector<4x256xf32>
    %29 = math.tanh %28 : vector<4x256xf32>
    %c0_17 = arith.constant 0 : index
    %c0_18 = arith.constant 0 : index
    %c0_19 = arith.constant 0 : index
    %30 = vector.load %arg7[%c0_17, %c0_18, %c0_19] : memref<1x4x256xf32, #tpu.memory_space<vmem>>, vector<1x4x256xf32>
    %31 = vector.shape_cast %30 : vector<1x4x256xf32> to vector<4x256xf32>
    %32 = vector.shape_cast %19 : vector<4x256xf32> to vector<1x4x256xf32>
    tpu.vector_store %arg7[%c0_17, %c0_18, %c0_19], %32 {strides = array<i32>} : memref<1x4x256xf32, #tpu.memory_space<vmem>>, vector<1x4x256xf32>,
    %c0_20 = arith.constant 0 : index
    %c0_21 = arith.constant 0 : index
    %c0_22 = arith.constant 0 : index
    %33 = vector.load %arg8[%c0_20, %c0_21, %c0_22] : memref<1x4x256xf32, #tpu.memory_space<vmem>>, vector<1x4x256xf32>
    %34 = vector.shape_cast %33 : vector<1x4x256xf32> to vector<4x256xf32>
    %35 = vector.shape_cast %25 : vector<4x256xf32> to vector<1x4x256xf32>
    tpu.vector_store %arg8[%c0_20, %c0_21, %c0_22], %35 {strides = array<i32>} : memref<1x4x256xf32, #tpu.memory_space<vmem>>, vector<1x4x256xf32>,
    %c0_23 = arith.constant 0 : index
    %c0_24 = arith.constant 0 : index
    %c0_25 = arith.constant 0 : index
    %36 = vector.load %arg9[%c0_23, %c0_24, %c0_25] : memref<1x4x256xf32, #tpu.memory_space<vmem>>, vector<1x4x256xf32>
    %37 = vector.shape_cast %36 : vector<1x4x256xf32> to vector<4x256xf32>
    %38 = vector.shape_cast %29 : vector<4x256xf32> to vector<1x4x256xf32>
    tpu.vector_store %arg9[%c0_23, %c0_24, %c0_25], %38 {strides = array<i32>} : memref<1x4x256xf32, #tpu.memory_space<vmem>>, vector<1x4x256xf32>,
    %39 = tpu.concatenate %25, %29 in 0 : vector<4x256xf32>, vector<4x256xf32> -> vector<8x256xf32>
    %c0_26 = arith.constant 0 : index
    %c0_27 = arith.constant 0 : index
    %40 = vector.load %arg6[%c0_26, %c0_27] : memref<256x64xf32, #tpu.memory_space<vmem>>, vector<256x64xf32>
    %cst_28 = arith.constant dense<0.000000e+00> : vector<8x64xf32>
    %41 = tpu.matmul %39, %40, %cst_28 {dimension_numbers = #tpu.dot_dimension_numbers<[1], [0], [0], [1], [0, 0, 1, 1], [], []>} : vector<8x256xf32>, vector<256x64xf32>, vector<8x64xf32> -> vector<8x64xf32>
    %42 = vector.extract_strided_slice %41 {offsets = [0, 0], sizes = [4, 64], strides = [1, 1]} : vector<8x64xf32> to vector<4x64xf32>
    %c0_29 = arith.constant 0 : index
    %c0_30 = arith.constant 0 : index
    %c0_31 = arith.constant 0 : index
    %43 = vector.load %arg10[%c0_29, %c0_30, %c0_31] : memref<1x4x64xf32, #tpu.memory_space<vmem>>, vector<1x4x64xf32>
    %44 = vector.shape_cast %43 : vector<1x4x64xf32> to vector<4x64xf32>
    %45 = vector.shape_cast %42 : vector<4x64xf32> to vector<1x4x64xf32>
    tpu.vector_store %arg10[%c0_29, %c0_30, %c0_31], %45 {strides = array<i32>} : memref<1x4x64xf32, #tpu.memory_space<vmem>>, vector<1x4x64xf32>,
    %46 = vector.extract_strided_slice %41 {offsets = [4, 0], sizes = [4, 64], strides = [1, 1]} : vector<8x64xf32> to vector<4x64xf32>
    %c0_32 = arith.constant 0 : index
    %c0_33 = arith.constant 0 : index
    %c0_34 = arith.constant 0 : index
    %47 = vector.load %arg11[%c0_32, %c0_33, %c0_34] : memref<1x4x64xf32, #tpu.memory_space<vmem>>, vector<1x4x64xf32>
    %48 = vector.shape_cast %47 : vector<1x4x64xf32> to vector<4x64xf32>
    %49 = vector.shape_cast %46 : vector<4x64xf32> to vector<1x4x64xf32>
    tpu.vector_store %arg11[%c0_32, %c0_33, %c0_34], %49 {strides = array<i32>} : memref<1x4x64xf32, #tpu.memory_space<vmem>>, vector<1x4x64xf32>,
    return
  }
  func.func @transform_0(%arg0: i32) -> (i32, i32, i32) {
    %c0_i32 = arith.constant 0 : i32
    %c0_i32_0 = arith.constant 0 : i32
    %c0_i32_1 = arith.constant 0 : i32
    return %arg0, %c0_i32, %c0_i32_0 : i32, i32, i32
  }
  func.func @transform_1(%arg0: i32) -> (i32, i32, i32) {
    %c0_i32 = arith.constant 0 : i32
    %c0_i32_0 = arith.constant 0 : i32
    %c0_i32_1 = arith.constant 0 : i32
    return %arg0, %c0_i32, %c0_i32_0 : i32, i32, i32
  }
  func.func @transform_2(%arg0: i32) -> (i32, i32, i32) {
    %c0_i32 = arith.constant 0 : i32
    %c0_i32_0 = arith.constant 0 : i32
    %c0_i32_1 = arith.constant 0 : i32
    return %arg0, %c0_i32, %c0_i32_0 : i32, i32, i32
  }
  func.func @transform_3(%arg0: i32) -> (i32, i32) {
    %c0_i32 = arith.constant 0 : i32
    %c0_i32_0 = arith.constant 0 : i32
    %c0_i32_1 = arith.constant 0 : i32
    return %c0_i32, %c0_i32_0 : i32, i32
  }
  func.func @transform_4(%arg0: i32) -> (i32, i32) {
    %c0_i32 = arith.constant 0 : i32
    %c0_i32_0 = arith.constant 0 : i32
    %c0_i32_1 = arith.constant 0 : i32
    return %c0_i32, %c0_i32_0 : i32, i32
  }
  func.func @transform_5(%arg0: i32) -> (i32, i32) {
    %c0_i32 = arith.constant 0 : i32
    %c0_i32_0 = arith.constant 0 : i32
    %c0_i32_1 = arith.constant 0 : i32
    return %c0_i32, %c0_i32_0 : i32, i32
  }
  func.func @transform_6(%arg0: i32) -> (i32, i32, i32) {
    %c0_i32 = arith.constant 0 : i32
    %c0_i32_0 = arith.constant 0 : i32
    %c0_i32_1 = arith.constant 0 : i32
    return %arg0, %c0_i32, %c0_i32_0 : i32, i32, i32
  }
  func.func @transform_7(%arg0: i32) -> (i32, i32, i32) {
    %c0_i32 = arith.constant 0 : i32
    %c0_i32_0 = arith.constant 0 : i32
    %c0_i32_1 = arith.constant 0 : i32
    return %arg0, %c0_i32, %c0_i32_0 : i32, i32, i32
  }
  func.func @transform_8(%arg0: i32) -> (i32, i32, i32) {
    %c0_i32 = arith.constant 0 : i32
    %c0_i32_0 = arith.constant 0 : i32
    %c0_i32_1 = arith.constant 0 : i32
    return %arg0, %c0_i32, %c0_i32_0 : i32, i32, i32
  }
  func.func @transform_9(%arg0: i32) -> (i32, i32, i32) {
    %c0_i32 = arith.constant 0 : i32
    %c0_i32_0 = arith.constant 0 : i32
    %c0_i32_1 = arith.constant 0 : i32
    return %arg0, %c0_i32, %c0_i32_0 : i32, i32, i32
  }
  func.func @transform_10(%arg0: i32) -> (i32, i32, i32) {
    %c0_i32 = arith.constant 0 : i32
    %c0_i32_0 = arith.constant 0 : i32
    %c0_i32_1 = arith.constant 0 : i32
    return %arg0, %c0_i32, %c0_i32_0 : i32, i32, i32
  }
}

</mosaic_0001>

<bundles_post_ra>
// kernel: tpu_custom_call.1
= control target key start
LH: loop header
LB: loop body
LE: loop exit
PB: predicated region body
PF: predicated region fallthrough
CT: control target
= control target key end

     0   :  { %s1714_s0 = inlined_call_operand.vmem [shape: f32[2,54,256], index: 0, kind: input, shape index: {}]   ;;  %s1715_s1 = inlined_call_operand.vmem [shape: f32[2,4,256], index: 1, kind: input, shape index: {}]   ;;  %s1716_s2 = inlined_call_operand.vmem [shape: f32[2,4,256], index: 2, kind: input, shape index: {}]   ;;  %s1717_s3 = inlined_call_operand.vmem [shape: f32[12,54], index: 3, kind: input, shape index: {}]   ;;  %s1718_s4 = inlined_call_operand.vmem [shape: f32[12,1], index: 4, kind: input, shape index: {}]   ;;  %s1719_s5 = inlined_call_operand.vmem [shape: f32[256,64], index: 5, kind: input, shape index: {}]   ;;  %s1720_s6 = inlined_call_operand.hbm [shape: f32[2,4,256], index: 6, kind: output, shape index: {0}]   ;;  %s1721_s7 = inlined_call_operand.hbm [shape: f32[2,4,256], index: 7, kind: output, shape index: {1}]   ;;  %s1722_s8 = inlined_call_operand.hbm [shape: f32[2,4,256], index: 8, kind: output, shape index: {2}]   ;;  %s1723_s9 = inlined_call_operand.hbm [shape: f32[2,4,64], index: 9, kind: output, shape index: {3}]   ;;  %s1724_s10 = inlined_call_operand.hbm [shape: f32[2,4,64], index: 10, kind: output, shape index: {4}]  }
   0x1   :  { %1729 = sst [smem:[#allocation13_spill]] %s1714_s0 }
   0x2   :  { %1730 = sst [smem:[#allocation14_spill]] %s1715_s1 }
   0x3   :  { %1731 = sst [smem:[#allocation15_spill]] %s1716_s2 }
   0x4   :  { %1732 = sst [smem:[#allocation16_spill]] %s1717_s3 }
   0x5   :  { %1733 = sst [smem:[#allocation17_spill]] %s1718_s4 }
   0x6   :  { %1734 = sst [smem:[#allocation18_spill]] %s1719_s5 }
   0x7   :  { %1735 = sst [smem:[#allocation19_spill]] %s1721_s7 }
   0x8   :  { %16 = vsyncpa [#allocation3], 0 }
   0x9   :  { %18 = vsyncpa [#allocation3 + $0x1], 0 }
   0xa   :  { %19 = vsyncpa [#allocation5], 0 }
   0xb   :  { %21 = vsyncpa [#allocation5 + $0x1], 0 }
   0xc   :  { %22 = vsyncpa [#allocation8], 0 }
   0xd   :  { %24 = vsyncpa [#allocation8 + $0x1], 0  ;;  %s1369_s13 = smov 0   ;;  %s1371_s14 = smov 0  }
   0xe   :  { %s1373_s15 = smov 0   ;;  %s1375_s16 = smov 0  }
   0xf LB: > { %s1390_s17 = sadd.s32 4294967295, %s1305_s16   ;;  %s1725_s18 = sadd.s32 4294967294, %s1305_s16   ;;  %s1305_s16 = sphi %s1375_s16, %s1752_s16   ;;  %s1301_s15 = sphi %s1373_s15, %s1751_s15   ;;  %s1297_s14 = sphi %s1371_s14, %s1750_s14   ;;  %s1293_s13 = sphi %s1369_s13, %s1749_s13  }
  0x10   : > { %s1394_s19 = sadd.s32 1, %s1305_s16   ;;  %s178_s20 = sadd.s32 1, %s1301_s15 }
  0x11   : > { %s175_s21 = ssub.s32 %s1305_s16, %s1394_s19  ;;  %p188_p0 = scmp.ne.s32.totalorder %s1301_s15, %s1297_s14 }
  0x12   : > { %p176_p1 = scmp.eq.s32.totalorder %s175_s21, 0  ;;  %p189_p2 = scmp.eq.s32.totalorder %s1390_s17, 1 }
  0x13   : > { %p194_p3 = scmp.ne.s32.totalorder %s1297_s14, %s1293_s13  ;;  %p195_p4 = scmp.eq.s32.totalorder %s1725_s18, 1 }
  0x14   : > { %s1407_s22 = scalar_select %p176_p1, %s1301_s15, %s178_s20  }
  0x15   : > { %p1409_p5 = por %p189_p2, %p188_p0  ;;  %p1413_p6 = por %p195_p4, %p194_p3 }
  0x16   : > { %p994_p7 = scmp.ge.s32.totalorder %s1305_s16, 1  ;;  %p350_p8 = scmp.lt.s32.totalorder %s1305_s16, 3 }
  0x18   : > { %p351_p9 = pnand %p994_p7, %p350_p8 }
  0x19   : > { %p418_p10 = scmp.lt.s32.totalorder (!%p351_p9), %s1390_s17, 1  ;;  %s1738_s4 = sld [smem:[#allocation17_spill]] (!%p351_p9) }
  0x1a   : > { %354 = sbr.rel (%p351_p9) target bundleno = 506 (0x1fa), region = 44  ;;  %s1739_s5 = sld [smem:[#allocation18_spill]] (!%p351_p9) }
  0x1b   : > { %s1740_s0 = sld [smem:[#allocation13_spill]] (!%p351_p9)  ;;  %s1545_s28 = sand.u32 (!%p351_p9), 1, %s1297_s14  }
  0x1c   : > { %s1741_s3 = sld [smem:[#allocation16_spill]] (!%p351_p9)  ;;  %s1728_s11 = sand.u32 (!%p351_p9), 1, %s1390_s17  }
  0x1d   : > { %s1742_s1 = sld [smem:[#allocation14_spill]] (!%p351_p9)  ;;  %s1568_s26 = scalar_lea.sflag (!%p351_p9), [#allocation5], %s1728_s11 }
  0x1e   : > { %s1743_s2 = sld [smem:[#allocation15_spill]] (!%p351_p9) }
  0x1f   : > { %v1307_v0 = vmov 0.0   ;;  %v1308_v1 = vmov 0   ;;  %v450_v2 = vld [vmem:[%s1738_s4 + $0x8] sm:$0xf]  ;;  %s1425_s27 = scalar_select %p418_p10, %s1390_s17, 1  ;;  %v449_v5 = vld [vmem:[%s1738_s4] sm:$0xff] }
  0x20   : > { %539 = vmatprep.mubr.f32.mxu0 %v1307_v0  ;;  %1128 = vset.pattern.permute.xlu0 %v1308_v1  ;;  %v622_v3 = vld [vmem:[%s1739_s5 + $0xf8] sm:$0xff]  ;;  %vm468_vm0 = vcmask 1045504   ;;  %vm461_vm1 = vcmask 441344   ;;  %v621_v22 = vld [vmem:[%s1739_s5 + $0xf0] sm:$0xff]  ;;  %v620_v24 = vld [vmem:[%s1739_s5 + $0xe8] sm:$0xff]  ;;  %vm588_vm3 = vcmask 1043456  }
  0x21   : > { %458 = vperm.xlu0 %1128, %v450_v2   ;;  %v606_v4 = vld [vmem:[%s1739_s5 + $0x78] sm:$0xff]  ;;  %1031 = vmatprep.subr.mxu1 %v622_v3  ;;  %s1066_s21 = smul.u32 112, %s1425_s27  ;;  %v605_v23 = vld [vmem:[%s1739_s5 + $0x70] sm:$0xff]  ;;  %v604_v25 = vld [vmem:[%s1739_s5 + $0x68] sm:$0xff]  ;;  %s1026_s12 = sshll.u32 %s1425_s27, 3 }
  0x22   : > { %1032 = vmatpush3.msra.mxu1 %v606_v4  ;;  %v433_v20 = vld [vmem:[%s1741_s3] sm:$0xff]  ;;  %v434_v21 = vld [vmem:[%s1741_s3 + $0x8] sm:$0xf]  ;;  %v618_v28 = vld [vmem:[%s1739_s5 + $0xd8] sm:$0xff]  ;;  %s1548_s27 = sshll.u32 %s1545_s28, 3  ;;  %s1744_s7 = sld [smem:[#allocation19_spill]] }
  0x23   : > { %s422_s18 = scalar_lea.vmem %s1740_s0, %s1066_s21  ;;  %1033 = vmatprep.subr.mxu1 %v621_v22  ;;  %v619_v26 = vld [vmem:[%s1739_s5 + $0xe0] sm:$0xff]  ;;  %v602_v29 = vld [vmem:[%s1739_s5 + $0x58] sm:$0xff]  ;;  %v617_v30 = vld [vmem:[%s1739_s5 + $0xd0] sm:$0xff]  ;;  %s427_s21 = scalar_lea.vmem %s1742_s1, %s1026_s12 }
  0x24   : > { %v448_v6 = vld [vmem:[%s422_s18 + $0x68] sm:$0x3f]  ;;  %v447_v7 = vld [vmem:[%s422_s18 + $0x60] sm:$0x3f]  ;;  %v446_v8 = vld [vmem:[%s422_s18 + $0x58] sm:$0xff]  ;;  %1034 = vmatpush3.msra.mxu1 %v605_v23  ;;  %s432_s0 = scalar_lea.vmem %s1743_s2, %s1026_s12  ;;  %s396_s29 = scalar_lea.vmem [#allocation4], %s1548_s27 }
  0x25   : > { %453 = vperm.xlu0 %1128, %v449_v5   ;;  %1005 = vmatprep.subr.msk.mxu0 %vm468_vm0, %v448_v6  ;;  %v445_v9 = vld [vmem:[%s422_s18 + $0x50] sm:$0xff]  ;;  %v444_v10 = vld [vmem:[%s422_s18 + $0x48] sm:$0xff]  ;;  %v443_v11 = vld [vmem:[%s422_s18 + $0x40] sm:$0xff]  ;;  %s1727_s30 = scalar_lea.vmem [#allocation6], %s1548_s27  ;;  %s1560_s12 = sshll.u32 %s1390_s17, 7 }
  0x26   : > { %1006 = vmatpush1.msk.msra.mxu0 %vm468_vm0, %v447_v7  ;;  %v442_v12 = vld [vmem:[%s422_s18 + $0x38] sm:$0xff]  ;;  %v441_v13 = vld [vmem:[%s422_s18 + $0x30] sm:$0xff]  ;;  %v440_v14 = vld [vmem:[%s422_s18 + $0x28] sm:$0xff]  ;;  %1035 = vmatprep.subr.mxu1 %v620_v24  ;;  %s746_s25 = sshll.u32 %s396_s29, 4  ;;  %s1309_s1 = smov [#allocation4]   ;;  %s747_s25 = int_to_ptr.vmem [resolvable:$true] %s746_s25 }
  0x27   : > { %495 = vmatprep.subr.mxu0 %v446_v8  ;;  %v439_v15 = vld [vmem:[%s422_s18 + $0x20] sm:$0xff]  ;;  %v438_v16 = vld [vmem:[%s422_s18 + $0x18] sm:$0xff]  ;;  %v437_v17 = vld [vmem:[%s422_s18 + $0x10] sm:$0xff]  ;;  %1036 = vmatpush3.msra.mxu1 %v604_v25 }
  0x28   : > { %496 = vmatpush1.msra.mxu0 %v445_v9  ;;  %v436_v18 = vld [vmem:[%s422_s18 + $0x8] sm:$0xff]  ;;  %v435_v19 = vld [vmem:[%s422_s18] sm:$0xff]  ;;  %1037 = vmatprep.subr.mxu1 %v619_v26  ;;  %v601_v31 = vld [vmem:[%s1739_s5 + $0x50] sm:$0xff] }
  0x29   : > { %497 = vmatprep.subr.mxu0 %v444_v10  ;;  %v603_v27 = vld [vmem:[%s1739_s5 + $0x60] sm:$0xff]  ;;  %v616_v32 = vld [vmem:[%s1739_s5 + $0xc8] sm:$0xff]  ;;  %v614_v36 = vld [vmem:[%s1739_s5 + $0xb8] sm:$0xff] }
  0x2a   : > { %498 = vmatpush1.msra.mxu0 %v443_v11  ;;  %1038 = vmatpush3.msra.mxu1 %v603_v27  ;;  %v600_v33 = vld [vmem:[%s1739_s5 + $0x48] sm:$0xff]  ;;  %v615_v34 = vld [vmem:[%s1739_s5 + $0xc0] sm:$0xff]  ;;  %v598_v37 = vld [vmem:[%s1739_s5 + $0x38] sm:$0xff] }
  0x2b   : > { %499 = vmatprep.subr.mxu0 %v442_v12  ;;  %1039 = vmatprep.subr.mxu1 %v618_v28  ;;  %v599_v35 = vld [vmem:[%s1739_s5 + $0x40] sm:$0xff]  ;;  %v613_v38 = vld [vmem:[%s1739_s5 + $0xb0] sm:$0xff]  ;;  %v612_v40 = vld [vmem:[%s1739_s5 + $0xa8] sm:$0xff] }
  0x2c   : > { %500 = vmatpush1.msra.mxu0 %v441_v13  ;;  %1040 = vmatpush3.msra.mxu1 %v602_v29  ;;  %v597_v39 = vld [vmem:[%s1739_s5 + $0x30] sm:$0xff]  ;;  %v596_v41 = vld [vmem:[%s1739_s5 + $0x28] sm:$0xff]  ;;  %v611_v42 = vld [vmem:[%s1739_s5 + $0xa0] sm:$0xff] }
  0x2d   : > { %501 = vmatprep.subr.mxu0 %v440_v14  ;;  %1041 = vmatprep.subr.mxu1 %v617_v30  ;;  %v595_v43 = vld [vmem:[%s1739_s5 + $0x20] sm:$0xff]  ;;  %v610_v44 = vld [vmem:[%s1739_s5 + $0x98] sm:$0xff]  ;;  %v609_v46 = vld [vmem:[%s1739_s5 + $0x90] sm:$0xff] }
  0x2e   : > { %502 = vmatpush1.msra.mxu0 %v439_v15  ;;  %1042 = vmatpush3.msra.mxu1 %v601_v31  ;;  %v594_v45 = vld [vmem:[%s1739_s5 + $0x18] sm:$0xff]  ;;  %v593_v47 = vld [vmem:[%s1739_s5 + $0x10] sm:$0xff]  ;;  %v608_v48 = vld [vmem:[%s1739_s5 + $0x88] sm:$0xff] }
  0x2f   : > { %503 = vmatprep.subr.mxu0 %v438_v16  ;;  %1043 = vmatprep.subr.mxu1 %v616_v32  ;;  %v592_v49 = vld [vmem:[%s1739_s5 + $0x8] sm:$0xff]  ;;  %v607_v50 = vld [vmem:[%s1739_s5 + $0x80] sm:$0xff] }
  0x30   : > { %504 = vmatpush1.msra.mxu0 %v437_v17  ;;  %1044 = vmatpush3.msra.mxu1 %v600_v33  ;;  %v591_v51 = vld [vmem:[%s1739_s5] sm:$0xff] }
  0x31   : > { %505 = vmatprep.subr.mxu0 %v436_v18  ;;  %1045 = vmatprep.subr.mxu1 %v615_v34  ;;  %v552_v53 = vld [vmem:[%s427_s21] sm:$0xff]  ;;  %s744_s21 = scalar_lea.hbm %s1744_s7, %s1560_s12 }
  0x32   : > { %506 = vmatpush1.msra.mxu0 %v435_v19  ;;  %1046 = vmatpush3.msra.mxu1 %v599_v35  ;;  %v553_v54 = vld [vmem:[%s432_s0] sm:$0xff]  ;;  %v554_v55 = vmul.f32 0.3, %v552_v53  ;;  %s1726_s0 = scalar_lea.vmem [#allocation2], %s1548_s27 }
  0x33   : > { %1007 = vmatmul.mubr.msk.f32.vlgmr.msra.gmra.mxu0 %vm461_vm1, %v433_v20  ;;  %1047 = vmatprep.subr.mxu1 %v614_v36  ;;  %v555_v56 = vsub.f32 1.0, %v553_v54 }
  0x34   : > { %545 = vmatprep.mubr.f32.mxu0 %v1307_v0  ;;  %1048 = vmatpush3.msra.mxu1 %v598_v37 }
  0x35   : > { %1049 = vmatprep.subr.mxu1 %v613_v38  ;;  %v556_v62 = vmul.f32 %v555_v56, %v554_v55 }
  0x36   : > { %1050 = vmatpush3.msra.mxu1 %v597_v39 }
  0x37   : > { %1008 = vmatmul.mubr.msk.f32.gmra.mxu0 %vm461_vm1, %v434_v21  ;;  %1051 = vmatprep.subr.mxu1 %v612_v40 }
  0x38   : > { %1052 = vmatpush3.msra.mxu1 %v596_v41 }
  0x39   : > { %1053 = vmatprep.subr.mxu1 %v611_v42 }
  0x3a   : > { %1054 = vmatpush3.msra.mxu1 %v595_v43 }
  0x3b   : > { %1055 = vmatprep.subr.mxu1 %v610_v44 }
  0x3c   : > { %1056 = vmatpush3.msra.mxu1 %v594_v45 }
  0x3d   : > { %1057 = vmatprep.subr.mxu1 %v609_v46 }
  0x3e   : > { %1058 = vmatpush3.msra.mxu1 %v593_v47 }
  0x3f   : > { %1059 = vmatprep.subr.mxu1 %v608_v48 }
  0x40   : > { %1060 = vmatpush3.msra.mxu1 %v592_v49 }
  0x41   : > { %1061 = vmatprep.subr.mxu1 %v607_v50 }
  0x42   : > { %1062 = vmatpush3.msra.mxu1 %v591_v51 }
  0x9c   : > { %v459_v52 = vpop.permute.xlu0 %458 }
  0xa0   : > { %v454_v57 = vpop.permute.xlu0 %453 }
  0xf3   : > { %v541_v58 = vpop.f32.mrf.mxu0 }
  0xf4   : > { %v542_v60 = vadd.f32 %v541_v58, %v454_v57 }
  0xf5   : > { %v543_v59 = vpop.f32.mrf.mxu0 }
  0xf6   : > { %v544_v61 = vadd.f32 %v543_v59, %v454_v57 }
  0xf7   : > { %v547_v63 = vpop.f32.mrf.mxu0 }
  0xf8   : > { %v559_v1 = vcombine.low %v542_v60, %v544_v61  ;;  %v548_v2 = vadd.f32 %v547_v63, %v459_v52 }
  0xf9   : > { %v549_v3 = vpop.f32.mrf.mxu0 }
  0xfa   : > { %v561_v4 = vadd.f32 %v559_v1, %v556_v62  ;;  %v566_v5 = vmax.f32 %v548_v2, 0.0  ;;  %v550_v6 = vadd.f32 %v549_v3, %v459_v52 }
  0xfc   : > { %v1009_v7 = vadd.f32 -0.5, %v561_v4  ;;  %v570_v8 = vrot.slane %v566_v5, 4  ;;  %v567_v9 = vmax.f32 %v550_v6, 0.0  ;;  %578 = vst [vmem:[%s1726_s0] sm:$0xff] %v561_v4  ;;  %s1133_s0 = scalar_lea.vmem %s747_s25, 128 }
  0xfd   : > { %p1134_p11 = scmp.ne.s32.totalorder %s747_s25, %s1133_s0 }
  0xfe   : > { %vm563_vm2 = vcmp.gt.f32.partialorder %v1009_v7, 0.0  ;;  %v574_v10 = vadd.f32 %v570_v8, %v542_v60  ;;  %v571_v11 = vrot.slane %v567_v9, 4 }
  0xff   : > { %v1010_v12 = vsel %vm563_vm2, 1.0, %v1307_v0  ;;  %p1135_p12 = pnand %p1134_p11, %p1409_p5 }
 0x100   : > { %v575_v13 = vadd.f32 %v571_v11, %v544_v61  ;;  %579 = vst [vmem:[%s396_s29] sm:$0xff] %v1010_v12  ;;  %1129 = vtanh.f32 %v574_v10  ;;  %v586_v15 = vcombine.high %v1010_v12, %v1010_v12 }
 0x101   : > { %p1136_p13 = pneg %p1135_p12 }
 0x102   : > { %1131 = vtanh.f32 %v575_v13 }
 0x10d   : > { %v1130_v14 = vpop.eup %1129 }
 0x10e   : > { %v589_v19 = vsel %vm588_vm3, %v1010_v12, %v1130_v14 }
 0x10f   : > { %v1132_v16 = vpop.eup %1131 }
 0x110   : > { %v590_v17 = vsel %vm588_vm3, %v586_v15, %v1132_v16  ;;  %v582_v18 = vcombine.high %v1130_v14, %v1132_v16 }
 0x111   : > { %687 = vmatprep.mubr.f32.mxu1 %v590_v17 }
 0x112   : > { %688 = vmatmul.mubr.f32.vlgmr.msra.gmra.mxu1 %v589_v19  ;;  %584 = vst [vmem:[%s1727_s30] sm:$0xff] %v582_v18  ;;  %s1137_s30 = sshll.u32 %s1309_s1, 4  ;;  %s1138_s30 = int_to_ptr.vmem [resolvable:$false] %s1137_s30 }
 0x113   : > { %s1139_s2 = scalar_lea.vmem %s1138_s30, 256  ;;  %p1140_p0 = scmp.lt.s32.totalorder %s747_s25, %s1138_s30 }
 0x114   : > { %p1141_p1 = scmp.lt.s32.totalorder %s1139_s2, %s1133_s0 }
 0x116   : > { %p1142_p2 = por %p1141_p1, %p1140_p0 }
 0x118   : > { %p1143_p3 = pnand %p1142_p2, %p1136_p13 }
 0x11a   : > { %1146 = shalt.err (!%p1143_p3)
}
 0x11b   : > { %s1147_s20 = scalar_lea.hbm %s744_s21, 128  ;;  %s1151_s11 = scalar_lea.hbm %s1744_s7, 256 }
 0x11c   : > { %p1148_p4 = scmp.ne.s32.totalorder %s744_s21, %s1147_s20  ;;  %p1152_p9 = scmp.lt.s32.totalorder %s744_s21, %s1744_s7 }
 0x11d   : > { %p1153_p10 = scmp.lt.s32.totalorder %s1151_s11, %s1147_s20 }
 0x11e   : > { %p1149_p7 = pnand %p1148_p4, %p1409_p5 }
 0x11f   : > { %p1154_p11 = por %p1153_p10, %p1152_p9 }
 0x120   : > { %p1150_p8 = pneg %p1149_p7 }
 0x122   : > { %p1155_p12 = pnand %p1154_p11, %p1150_p8 }
 0x124   : > { %1158 = shalt.err (!%p1155_p12)
}
 0x125   : > { %1068 = dma.vmem_to_hbm [thread:$0]  (%p1409_p5), %s747_s25, 128, %s744_s21, %s1568_s26  }
 0x126   : > { %s1587_s0 = scalar_lea.hbm %s1720_s6, %s1560_s12  ;;  %s1745_s3 = scalar_lea.vmem [#allocation2], %s1548_s27 }
 0x127   : > { %s732_s4 = sshll.u32 %s1745_s3, 4  ;;  %s1595_s20 = scalar_lea.hbm %s1722_s8, %s1560_s12  ;;  %s733_s4 = int_to_ptr.vmem [resolvable:$true] %s732_s4 }
 0x128   : > { %s1746_s29 = scalar_lea.vmem [#allocation6], %s1548_s27  ;;  %s698_s5 = scalar_lea.sflag [#allocation3], %s1545_s28 }
 0x129   : > { %s760_s18 = sshll.u32 %s1746_s29, 4  ;;  %s1159_s7 = scalar_lea.vmem %s733_s4, 128  ;;  %s761_s18 = int_to_ptr.vmem [resolvable:$true] %s760_s18 }
 0x12a   : > { %p1160_p13 = scmp.ne.s32.totalorder %s733_s4, %s1159_s7  ;;  %s1310_s21 = smov [#allocation2]  }
 0x12b   : > { %s1163_s25 = sshll.u32 %s1310_s21, 4  ;;  %s1164_s25 = int_to_ptr.vmem [resolvable:$false] %s1163_s25 }
 0x12c   : > { %p1161_p0 = pnand %p1160_p13, %p1409_p5  ;;  %s1165_s1 = scalar_lea.vmem %s1164_s25, 256 }
 0x12d   : > { %p1166_p2 = scmp.lt.s32.totalorder %s733_s4, %s1164_s25  ;;  %p1167_p3 = scmp.lt.s32.totalorder %s1165_s1, %s1159_s7 }
 0x12e   : > { %p1162_p1 = pneg %p1161_p0 }
 0x12f   : > { %p1168_p4 = por %p1167_p3, %p1166_p2 }
 0x131   : > { %p1169_p7 = pnand %p1168_p4, %p1162_p1 }
 0x133   : > { %1172 = shalt.err (!%p1169_p7)
}
 0x134   : > { %s1173_s27 = scalar_lea.hbm %s1587_s0, 128  ;;  %s1177_s3 = scalar_lea.hbm %s1720_s6, 256 }
 0x135   : > { %p1174_p8 = scmp.ne.s32.totalorder %s1587_s0, %s1173_s27  ;;  %p1178_p11 = scmp.lt.s32.totalorder %s1587_s0, %s1720_s6 }
 0x136   : > { %p1179_p12 = scmp.lt.s32.totalorder %s1177_s3, %s1173_s27 }
 0x137   : > { %p1175_p9 = pnand %p1174_p8, %p1409_p5 }
 0x138   : > { %p1180_p13 = por %p1179_p12, %p1178_p11 }
 0x139   : > { %p1176_p10 = pneg %p1175_p9 }
 0x13b   : > { %p1181_p0 = pnand %p1180_p13, %p1176_p10 }
 0x13d   : > { %1184 = shalt.err (!%p1181_p0)
}
 0x13e   : > { %1067 = dma.vmem_to_hbm [thread:$0]  (%p1409_p5), %s733_s4, 128, %s1587_s0, %s698_s5  }
 0x13f   : > { %s1185_s7 = scalar_lea.vmem %s761_s18, 128  ;;  %s1311_s29 = smov [#allocation6]  }
 0x140   : > { %p1186_p1 = scmp.ne.s32.totalorder %s761_s18, %s1185_s7  ;;  %s1189_s21 = sshll.u32 %s1311_s29, 4  ;;  %s1190_s21 = int_to_ptr.vmem [resolvable:$false] %s1189_s21 }
 0x141   : > { %s1191_s25 = scalar_lea.vmem %s1190_s21, 256  ;;  %p1192_p4 = scmp.lt.s32.totalorder %s761_s18, %s1190_s21 }
 0x142   : > { %p1187_p2 = pnand %p1186_p1, %p1409_p5  ;;  %p1193_p7 = scmp.lt.s32.totalorder %s1191_s25, %s1185_s7 }
 0x144   : > { %p1188_p3 = pneg %p1187_p2  ;;  %p1194_p8 = por %p1193_p7, %p1192_p4 }
 0x146   : > { %p1195_p9 = pnand %p1194_p8, %p1188_p3 }
 0x148   : > { %1198 = shalt.err (!%p1195_p9)
}
 0x149   : > { %s1199_s5 = scalar_lea.hbm %s1595_s20, 128  ;;  %s1203_s1 = scalar_lea.hbm %s1722_s8, 256 }
 0x14a   : > { %p1200_p10 = scmp.ne.s32.totalorder %s1595_s20, %s1199_s5  ;;  %p1204_p13 = scmp.lt.s32.totalorder %s1595_s20, %s1722_s8 }
 0x14b   : > { %p1205_p0 = scmp.lt.s32.totalorder %s1203_s1, %s1199_s5 }
 0x14c   : > { %p1201_p11 = pnand %p1200_p10, %p1409_p5 }
 0x14d   : > { %p1206_p1 = por %p1205_p0, %p1204_p13 }
 0x14e   : > { %p1202_p12 = pneg %p1201_p11 }
 0x150   : > { %p1207_p2 = pnand %p1206_p1, %p1202_p12 }
 0x152   : > { %1210 = shalt.err (!%p1207_p2)
}
 0x153   : > { %1069 = dma.vmem_to_hbm [thread:$0]  (%p1409_p5), %s761_s18, 128, %s1595_s20, %s1568_s26   ;;  %vm695_vm4 = vcmask 523268   ;;  %vm693_vm5 = vcmask 519168  }
 0x154   : > { %s998_s2 = sshll.u32 %s1545_s28, 2  ;;  %s1022_s3 = sshll.u32 %s1390_s17, 6 }
 0x155   : > { %s410_s30 = scalar_lea.vmem [#allocation7], %s998_s2  ;;  %s417_s7 = scalar_lea.vmem [#allocation9], %s998_s2 }
 0x156   : > { %s773_s11 = sshll.u32 %s410_s30, 4  ;;  %s786_s29 = sshll.u32 %s417_s7, 4  ;;  %s1640_s11 = int_to_ptr.vmem [resolvable:$true] %s773_s11  ;;  %s1647_s29 = int_to_ptr.vmem [resolvable:$true] %s786_s29 }
 0x157   : > { %s1638_s5 = scalar_lea.hbm %s1723_s9, %s1022_s3  ;;  %s1645_s20 = scalar_lea.hbm %s1724_s10, %s1022_s3 }
 0x158   : > { %s1747_s18 = sand.u32 1, %s1390_s17   ;;  %s1211_s4 = scalar_lea.vmem %s1640_s11, 64 }
 0x159   : > { %s1651_s0 = scalar_lea.sflag [#allocation8], %s1747_s18  ;;  %p1212_p3 = scmp.ne.s32.totalorder %s1640_s11, %s1211_s4 }
 0x15a   : > { %s1312_s1 = smov [#allocation7]  }
 0x15b   : > { %p1213_p4 = pnand %p1212_p3, %p1409_p5  ;;  %s1215_s27 = sshll.u32 %s1312_s1, 4  ;;  %s1216_s27 = int_to_ptr.vmem [resolvable:$false] %s1215_s27 }
 0x15c   : > { %s1217_s12 = scalar_lea.vmem %s1216_s27, 128  ;;  %p1218_p8 = scmp.lt.s32.totalorder %s1640_s11, %s1216_s27 }
 0x15d   : > { %p1214_p7 = pneg %p1213_p4  ;;  %p1219_p9 = scmp.lt.s32.totalorder %s1217_s12, %s1211_s4 }
 0x15f   : > { %p1220_p10 = por %p1219_p9, %p1218_p8 }
 0x161   : > { %p1221_p11 = pnand %p1220_p10, %p1214_p7 }
 0x1d2   : > { %v1063_v0 = vpop.f32.mrf.mxu1 }
 0x1d4   : > { %v1064_v20 = vpop.f32.mrf.mxu1 }
 0x1d5   : > { %v1065_v21 = vadd.f32 %v1064_v20, %v1063_v0 }
 0x1d7   : > { %696 = vst.msk [vmem:[%s417_s7 - $0x4] sm:$0xf0] %vm695_vm4, %v1065_v21 }
 0x1d8   : > { %694 = vst.msk [vmem:[%s410_s30] sm:$0xf] %vm693_vm5, %v1065_v21 }
 0x1d9   : > { %1224 = shalt.err (!%p1221_p11)
}
 0x1da   : > { %s1225_s17 = scalar_lea.hbm %s1638_s5, 64  ;;  %s1229_s30 = scalar_lea.hbm %s1723_s9, 128 }
 0x1db   : > { %p1226_p12 = scmp.ne.s32.totalorder %s1638_s5, %s1225_s17  ;;  %p1230_p1 = scmp.lt.s32.totalorder %s1638_s5, %s1723_s9 }
 0x1dc   : > { %p1231_p2 = scmp.lt.s32.totalorder %s1229_s30, %s1225_s17 }
 0x1dd   : > { %p1227_p13 = pnand %p1226_p12, %p1409_p5 }
 0x1de   : > { %p1232_p3 = por %p1231_p2, %p1230_p1 }
 0x1df   : > { %p1228_p0 = pneg %p1227_p13 }
 0x1e1   : > { %p1233_p4 = pnand %p1232_p3, %p1228_p0 }
 0x1e3   : > { %1236 = shalt.err (!%p1233_p4)
}
 0x1e4   : > { %1070 = dma.vmem_to_hbm [thread:$0]  (%p1409_p5), %s1640_s11, 64, %s1638_s5, %s1651_s0  }
 0x1e5   : > { %s1237_s25 = scalar_lea.vmem %s1647_s29, 64  ;;  %s1313_s28 = smov [#allocation9]  }
 0x1e6   : > { %p1238_p7 = scmp.ne.s32.totalorder %s1647_s29, %s1237_s25  ;;  %s1241_s26 = sshll.u32 %s1313_s28, 4  ;;  %s1242_s26 = int_to_ptr.vmem [resolvable:$false] %s1241_s26 }
 0x1e7   : > { %s1243_s18 = scalar_lea.vmem %s1242_s26, 128  ;;  %p1244_p10 = scmp.lt.s32.totalorder %s1647_s29, %s1242_s26 }
 0x1e8   : > { %p1239_p8 = pnand %p1238_p7, %p1409_p5  ;;  %p1245_p11 = scmp.lt.s32.totalorder %s1243_s18, %s1237_s25 }
 0x1ea   : > { %p1240_p9 = pneg %p1239_p8  ;;  %p1246_p12 = por %p1245_p11, %p1244_p10 }
 0x1ec   : > { %p1247_p13 = pnand %p1246_p12, %p1240_p9 }
 0x1ee   : > { %1250 = shalt.err (!%p1247_p13)
}
 0x1ef   : > { %s1251_s4 = scalar_lea.hbm %s1645_s20, 64  ;;  %s1255_s1 = scalar_lea.hbm %s1724_s10, 128 }
 0x1f0   : > { %p1252_p0 = scmp.ne.s32.totalorder %s1645_s20, %s1251_s4  ;;  %p1256_p3 = scmp.lt.s32.totalorder %s1645_s20, %s1724_s10 }
 0x1f1   : > { %p1257_p4 = scmp.lt.s32.totalorder %s1255_s1, %s1251_s4 }
 0x1f2   : > { %p1253_p1 = pnand %p1252_p0, %p1409_p5 }
 0x1f3   : > { %p1258_p7 = por %p1257_p4, %p1256_p3 }
 0x1f4   : > { %p1254_p2 = pneg %p1253_p1 }
 0x1f6   : > { %p1259_p8 = pnand %p1258_p7, %p1254_p2 }
 0x1f8   : > { %1262 = shalt.err (!%p1259_p8)
}
 0x1f9   : > { %1071 = dma.vmem_to_hbm [thread:$0]  (%p1409_p5), %s1647_s29, 64, %s1645_s20, %s1651_s0  }
 0x1fa PF: > { %p1093_p9 = scmp.ge.s32.totalorder %s1305_s16, 2  ;;  %s798_s17 = sand.u32 1, %s1293_s13  }
 0x1fb   : > { %s799_s2 = scalar_lea.sflag [#allocation3], %s798_s17 }
 0x1fc   : > { %p1078_p10 = pnand %p1093_p9, %p1413_p6 }
 0x1fe   : > { %p1079_p11 = pneg %p1078_p10 }
 0x200   : > { %1280 = dma.done.wait (%p1079_p11), %s799_s2, 128  }
 0x201   : > { %1282 = vsyncadd (%p1079_p11), %s799_s2, 4294967168  ;;  %s1748_s3 = sadd.s32 4294967294, %s1305_s16  }
 0x202   : > { %s807_s30 = sand.u32 1, %s1748_s3  }
 0x203   : > { %s808_s23 = scalar_lea.sflag [#allocation5], %s807_s30 }
 0x204   : > { %1284 = dma.done.wait (%p1079_p11), %s808_s23, 256  }
 0x205   : > { %1286 = vsyncadd (%p1079_p11), %s808_s23, 4294967040  ;;  %s826_s7 = scalar_lea.sflag [#allocation8], %s807_s30 }
 0x206   : > { %1288 = dma.done.wait (%p1079_p11), %s826_s7, 128  }
 0x207   : > { %1290 = vsyncadd (%p1079_p11), %s826_s7, 4294967168  ;;  %p27_p5 = scmp.ge.s32.totalorder %s1394_s19, 4   ;;  %s1749_s13 = smov %s1297_s14 }
 0x208   : > { %s1750_s14 = smov %s1301_s15  ;;  %s1751_s15 = smov %s1407_s22 }
 0x209   : > { %s1752_s16 = smov %s1394_s19  ;;  %29 = sbr.rel (!%p27_p5) target bundleno = 15 (0xf), region = 149 }
 0x20e   :  { %840 = vsyncpa [#allocation3], 1 }
 0x20f   :  { %842 = vsyncpa [#allocation3 + $0x1], 1 }
 0x210   :  { %843 = vsyncpa [#allocation5], 1 }
 0x211   :  { %845 = vsyncpa [#allocation5 + $0x1], 1 }
 0x212   :  { %846 = vsyncpa [#allocation8], 1 }
 0x213   :  { %848 = vsyncpa [#allocation8 + $0x1], 1 }

</bundles_post_ra>
